<compile_context>
chip_gen: v5e
topology: v5e:2x2
jax: 0.10.0
libtpu: 0.0.40
codegen_flags: <defaults>
</compile_context>

<pallas_src>
import functools
from math import gcd

import numpy as np
import jax
import jax.numpy as jnp
from jax.experimental import pallas as pl
from jax.experimental.pallas import tpu as pltpu


# ----------------------------------------------------------------------------- helpers
def _output_len(len_h, in_len, up, down):
    # scipy.signal._upfirdn._output_len
    return (((in_len - 1) * up + len_h) - 1) // down + 1


def _round_up(n, m):
    return ((n + m - 1) // m) * m


def _ceil_div(a, b):
    return -(-a // b)


_VMEM_BUDGET = 24 * 1024 * 1024   # per-step block budget (fits v7x's 64 MiB VMEM)
_VMEM_LIMIT = 48 * 1024 * 1024    # scoped VMEM limit handed to Mosaic


# ----------------------------------------------------------------------------- kernel
def _poly_kernel(w_ref, xa_ref, xh_ref, o_ref, v_ref, *, down, s_max):
    """One output tile of the polyphase resampler (MXU contraction).

    w_ref  : (up, KC)      f32 VMEM  polyphase weight matrix (full-array block)
    xa_ref : (down, TB)    f32 VMEM  main deinterleaved tile   XB[d, b0 + t]
    xh_ref : (down, HALO)  f32 VMEM  halo (next lanes)         XB[d, b0 + TB + t]
    o_ref  : (up, TB)      f32 VMEM  Y[r, b0 + t] = y[(b0 + t) * up + r]
    v_ref  : (KC, TB)      f32 VMEM  scratch: V[s*down + d, t] = XB[d, b0 + t + s]
    """
    tb = o_ref.shape[-1]
    a = xa_ref[...]

    # shift 0: straight copy into the first `down` rows
    v_ref[pl.ds(0, down), :] = a

    # NOTE: statically unrolled over shifts — fine for realistic filter lengths.
    # TODO(synk): for very long filters switch this to lax.fori_loop.
    for s in range(1, s_max + 1):
        # lane t of the rolled tile holds a[:, (t + s) mod tb]  (XLU rotate,
        # written straight into its destination rows — no concat/slice temporaries)
        v_ref[pl.ds(s * down, down), :] = pltpu.roll(a, tb - s, 1)
        # fix the s wrapped lanes at the right edge from the halo block
        v_ref[pl.ds(s * down, down), pl.ds(tb - s, s)] = xh_ref[:, :s]

    # One MXU contraction per tile: (up, KC) @ (KC, TB) with f32 accumulation.
    o_ref[...] = jnp.dot(w_ref[...], v_ref[...],
                         preferred_element_type=jnp.float32).astype(o_ref.dtype)


# ----------------------------------------------------------------------------- forward
def resample_poly_forward(x, filter_coeffs, up, down, lane_tile=None):
    up, down = int(up), int(down)
    g = gcd(up, down)
    up, down = up // g, down // g
    if up == 1 and down == 1:
        return x

    n_in = int(x.shape[0])
    filt_len = int(filter_coeffs.shape[0])

    # ---- scipy/cusignal resample_poly alignment math (all static ints) ----
    n_out = n_in * up
    n_out = n_out // down + bool(n_out % down)
    half_len = (filt_len - 1) // 2
    n_pre_pad = down - half_len % down
    n_post_pad = 0
    n_pre_remove = (half_len + n_pre_pad) // down
    while _output_len(filt_len + n_pre_pad + n_post_pad, n_in, up, down) < n_out + n_pre_remove:
        n_post_pad += 1
    lh = filt_len + n_pre_pad + n_post_pad

    # padded, up-scaled filter (values traced; length static)
    h_full = jnp.concatenate([
        jnp.zeros((n_pre_pad,), jnp.float32),
        filter_coeffs.astype(jnp.float32) * up,
        jnp.zeros((n_post_pad,), jnp.float32),
    ])

    # ---- polyphase decomposition (index math in static numpy) ----
    #   y[b*up + r] = sum_j h_full[p_r + j*up] * x_e[b*down + o_r - j]
    r_arr = np.arange(up)
    a_r = (r_arr + n_pre_remove) * down
    p_r = a_r % up
    o_r = a_r // up
    j_cnt = np.maximum(0, -(-(lh - p_r) // up))            # taps per output residue
    c_min = int(np.min(o_r - (j_cnt - 1)))
    c_max = int(np.max(o_r))
    lf = c_max - c_min + 1                                  # active weight columns

    s_max = (lf - 1) // down                                # max in-tile lane shift
    kc = (s_max + 1) * down                                 # V rows / W cols (>= lf)

    c_abs = np.arange(kc)[None, :] + c_min                  # (1, kc) absolute offset
    j_mat = o_r[:, None] - c_abs                            # (up, kc)
    k_mat = p_r[:, None] + j_mat * up                       # index into h_full
    valid = (j_mat >= 0) & (k_mat < lh)                     # extra cols (>= lf) -> 0
    k_clip = np.clip(k_mat, 0, lh - 1)
    w = jnp.where(jnp.asarray(valid), h_full[jnp.asarray(k_clip)], 0.0)
    w = w.astype(jnp.float32)                               # (up, kc), full-array block

    # ---- tiling (lane axis = block index b) ----
    halo_w = _round_up(s_max + 1, 128)                      # halo block width (lanes)
    nb_needed = _ceil_div(n_out, up)

    def _r8(n):
        return _round_up(max(int(n), 1), 8)

    # 8-sublane-padded per-lane VMEM cost: double-buffered in/out (+temps) + V scratch
    bytes_per_lane = 4 * (4 * _r8(down) + 3 * _r8(up) + _r8(kc))
    cap = max(halo_w, (_VMEM_BUDGET // bytes_per_lane) // halo_w * halo_w)
    if lane_tile is None:
        want = _round_up(_ceil_div(nb_needed, 2), halo_w)   # prefer >= 2 grid steps
        tb = max(halo_w, min(cap, want))
    else:
        tb = max(halo_w, min(cap, _round_up(int(lane_tile), halo_w)))
    assert s_max < halo_w <= tb and tb % halo_w == 0

    ntiles = _ceil_div(nb_needed, tb)
    nbp = ntiles * tb + halo_w                              # halo past last tile: zeros

    # ---- deinterleaved input  XB[d, b] = x_e[b*down + d + c_min]  (zero outside x) ----
    total = nbp * down
    x_flat = jnp.zeros((total,), jnp.float32)
    src_lo = max(0, c_min)
    src_hi = min(n_in, total + c_min)
    if src_hi > src_lo:
        x_flat = x_flat.at[src_lo - c_min: src_hi - c_min].set(
            x[src_lo:src_hi].astype(jnp.float32))
    xb = x_flat.reshape(nbp, down).T                        # (down, nbp)

    kernel = functools.partial(_poly_kernel, down=down, s_max=s_max)

    y2 = pl.pallas_call(
        kernel,
        out_shape=jax.ShapeDtypeStruct((up, ntiles * tb), jnp.float32),
        grid=(ntiles,),
        in_specs=[
            pl.BlockSpec((up, kc), lambda i: (0, 0)),                  # weights (tiny)
            pl.BlockSpec((down, tb), lambda i: (0, i)),                # main signal tile
            pl.BlockSpec((down, halo_w),                               # halo: next lanes
                         lambda i: (0, (i + 1) * (tb // halo_w))),
        ],
        out_specs=pl.BlockSpec((up, tb), lambda i: (0, i)),            # lane-dense output
        scratch_shapes=[pltpu.VMEM((kc, tb), jnp.float32)],            # shift-assembled V
        compiler_params=pltpu.CompilerParams(
            dimension_semantics=("parallel",),                         # megacore on v7x
            vmem_limit_bytes=_VMEM_LIMIT,
        ),
    )(w, xb, xb)

    # (up, NB) phase-major -> natural 1-D order (layout plumbing, done by XLA)
    y = y2.T.reshape(-1)[:n_out]
    return y.astype(x.dtype)


@functools.partial(jax.jit, static_argnames=("up", "down", "lane_tile"))
def _resample_poly_jit(x, filter_coeffs, *, up, down, lane_tile):
    return resample_poly_forward(x, filter_coeffs, up, down, lane_tile)


# ----------------------------------------------------------------------------- module analog
class ResamplePolyPallas:
    """JAX/Pallas analog of cusignal's ResamplePoly module (forward only)."""

    def __init__(self, up, down, filter_coeffs, lane_tile=None):
        self.up = int(up)
        self.down = int(down)
        self.lane_tile = None if lane_tile is None else int(lane_tile)
        self.filter_coeffs = jnp.asarray(filter_coeffs, jnp.float32)   # "Parameter"

    def __call__(self, x):
        return _resample_poly_jit(x, self.filter_coeffs,
                                  up=self.up, down=self.down, lane_tile=self.lane_tile)

    @classmethod
    def output_size(cls, input_size, up, down):
        out_size = input_size * up
        return out_size // down + bool(out_size % down)

    # TODO(synk): backward pass (gradients via 'valid' correlation) not implemented;
    #             only the forward pass is required here.


# ----------------------------------------------------------------------------- numpy reference
def resample_poly_ref(x, up, down, window):
    x = np.asarray(x, np.float64)
    window = np.asarray(window, np.float64)
    g = gcd(up, down)
    up, down = up // g, down // g
    if up == 1 and down == 1:
        return x.astype(np.float32)
    n_in = len(x)
    n_out = n_in * up
    n_out = n_out // down + bool(n_out % down)
    half_len = (len(window) - 1) // 2
    h = window * up
    n_pre_pad = down - half_len % down
    n_post_pad = 0
    n_pre_remove = (half_len + n_pre_pad) // down
    while _output_len(len(h) + n_pre_pad + n_post_pad, n_in, up, down) < n_out + n_pre_remove:
        n_post_pad += 1
    h = np.concatenate([np.zeros(n_pre_pad), h, np.zeros(n_post_pad)])
    x_up = np.zeros(up * n_in, np.float64)
    x_up[::up] = x
    conv = np.convolve(x_up, h)                # upfirdn before decimation
    y = conv[::down][n_pre_remove:n_pre_remove + n_out]
    return y.astype(np.float32)


# ----------------------------------------------------------------------------- main
if __name__ == "__main__":
    key = jax.random.PRNGKey(0)
    configs = [
        # (n_in, filt_len, up, down, lane_tile)
        (2000, 17, 3, 2, None),   # auto tile -> 2 grid steps, halo crosses real data
        (1500, 25, 2, 3, 512),    # downsample, single tile
        (700,  33, 5, 4, 128),    # larger factors, tiny tiles -> several grid steps
        (640,  21, 4, 4, None),   # identity after gcd reduction
        (4096, 15, 1, 3, None),   # pure decimation (up == 1)
        (3000, 31, 7, 1, 256),    # pure upsample (down == 1), many grid steps
    ]
    for (n_in, filt_len, up, down, lane_tile) in configs:
        kx, kf, key = jax.random.split(key, 3)
        x = jax.random.normal(kx, (n_in,), dtype=jnp.float32)
        # deterministic "parameter" init (synthetic filter coefficients)
        filter_coeffs = jax.random.normal(kf, (filt_len,), dtype=jnp.float32) * 0.1

        mod = ResamplePolyPallas(up, down, filter_coeffs, lane_tile=lane_tile)
        y = jax.block_until_ready(mod(x))

        g = gcd(up, down)
        if up // g == 1 and down // g == 1:
            assert y.shape == x.shape, (y.shape, x.shape)
            np.testing.assert_allclose(np.asarray(y), np.asarray(x), rtol=0, atol=0)
        else:
            expected_len = ResamplePolyPallas.output_size(n_in, up, down)
            assert y.shape == (expected_len,), (y.shape, expected_len)
            y_ref = resample_poly_ref(np.asarray(x), up, down, np.asarray(filter_coeffs))
            np.testing.assert_allclose(np.asarray(y), y_ref, rtol=5e-4, atol=5e-4)

    print("KERNEL_OK")
</pallas_src>

<mosaic_0001>
module attributes {stable_mosaic.version = 11 : i64} {
  func.func @_poly_kernel(%arg0: i32, %arg1: memref<3x8xf32, #tpu.memory_space<vmem>>, %arg2: memref<2x512xf32, #tpu.memory_space<vmem>>, %arg3: memref<2x128xf32, #tpu.memory_space<vmem>>, %arg4: memref<3x512xf32, #tpu.memory_space<vmem>>, %arg5: memref<8x512xf32, #tpu.memory_space<vmem>>) attributes {dimension_semantics = [#tpu.dimension_semantics<parallel>], iteration_bounds = array<i64: 2>, scalar_prefetch = 0 : i64, scratch_operands = 1 : i64, tpu.core_type = #tpu.core_type<tc>, window_params = [{pipeline_mode = #tpu.pipeline_mode<synchronous>, transform_indices = @transform_0, window_bounds = array<i64: 3, 8>}, {transform_indices = @transform_1, window_bounds = array<i64: 2, 512>}, {transform_indices = @transform_2, window_bounds = array<i64: 2, 128>}, {transform_indices = @transform_3, window_bounds = array<i64: 3, 512>}]} {
    %c0 = arith.constant 0 : index
    %c0_0 = arith.constant 0 : index
    %0 = vector.load %arg2[%c0, %c0_0] : memref<2x512xf32, #tpu.memory_space<vmem>>, vector<2x512xf32>
    %c0_1 = arith.constant 0 : index
    %c0_2 = arith.constant 0 : index
    %1 = vector.load %arg5[%c0_1, %c0_2] : memref<8x512xf32, #tpu.memory_space<vmem>>, vector<2x512xf32>
    tpu.vector_store %arg5[%c0_1, %c0_2], %0 {strides = array<i32>} : memref<8x512xf32, #tpu.memory_space<vmem>>, vector<2x512xf32>,
    %c511_i32 = arith.constant 511 : i32
    %2 = tpu.dynamic_rotate %0 by %c511_i32 dim 1 : vector<2x512xf32>, i32 -> vector<2x512xf32>
    %c2 = arith.constant 2 : index
    %c0_3 = arith.constant 0 : index
    %3 = vector.load %arg5[%c2, %c0_3] : memref<8x512xf32, #tpu.memory_space<vmem>>, vector<2x512xf32>
    tpu.vector_store %arg5[%c2, %c0_3], %2 {strides = array<i32>} : memref<8x512xf32, #tpu.memory_space<vmem>>, vector<2x512xf32>,
    %c0_4 = arith.constant 0 : index
    %c0_5 = arith.constant 0 : index
    %4 = vector.load %arg3[%c0_4, %c0_5] : memref<2x128xf32, #tpu.memory_space<vmem>>, vector<2x1xf32>
    %c2_6 = arith.constant 2 : index
    %c511 = arith.constant 511 : index
    %5 = vector.load %arg5[%c2_6, %c511] : memref<8x512xf32, #tpu.memory_space<vmem>>, vector<2x1xf32>
    tpu.vector_store %arg5[%c2_6, %c511], %4 {strides = array<i32>} : memref<8x512xf32, #tpu.memory_space<vmem>>, vector<2x1xf32>,
    %c510_i32 = arith.constant 510 : i32
    %6 = tpu.dynamic_rotate %0 by %c510_i32 dim 1 : vector<2x512xf32>, i32 -> vector<2x512xf32>
    %c4 = arith.constant 4 : index
    %c0_7 = arith.constant 0 : index
    %7 = vector.load %arg5[%c4, %c0_7] : memref<8x512xf32, #tpu.memory_space<vmem>>, vector<2x512xf32>
    tpu.vector_store %arg5[%c4, %c0_7], %6 {strides = array<i32>} : memref<8x512xf32, #tpu.memory_space<vmem>>, vector<2x512xf32>,
    %c0_8 = arith.constant 0 : index
    %c0_9 = arith.constant 0 : index
    %8 = vector.load %arg3[%c0_8, %c0_9] : memref<2x128xf32, #tpu.memory_space<vmem>>, vector<2x2xf32>
    %c4_10 = arith.constant 4 : index
    %c510 = arith.constant 510 : index
    %9 = vector.load %arg5[%c4_10, %c510] : memref<8x512xf32, #tpu.memory_space<vmem>>, vector<2x2xf32>
    tpu.vector_store %arg5[%c4_10, %c510], %8 {strides = array<i32>} : memref<8x512xf32, #tpu.memory_space<vmem>>, vector<2x2xf32>,
    %c509_i32 = arith.constant 509 : i32
    %10 = tpu.dynamic_rotate %0 by %c509_i32 dim 1 : vector<2x512xf32>, i32 -> vector<2x512xf32>
    %c6 = arith.constant 6 : index
    %c0_11 = arith.constant 0 : index
    %11 = vector.load %arg5[%c6, %c0_11] : memref<8x512xf32, #tpu.memory_space<vmem>>, vector<2x512xf32>
    tpu.vector_store %arg5[%c6, %c0_11], %10 {strides = array<i32>} : memref<8x512xf32, #tpu.memory_space<vmem>>, vector<2x512xf32>,
    %c0_12 = arith.constant 0 : index
    %c0_13 = arith.constant 0 : index
    %12 = vector.load %arg3[%c0_12, %c0_13] : memref<2x128xf32, #tpu.memory_space<vmem>>, vector<2x3xf32>
    %c6_14 = arith.constant 6 : index
    %c509 = arith.constant 509 : index
    %13 = vector.load %arg5[%c6_14, %c509] : memref<8x512xf32, #tpu.memory_space<vmem>>, vector<2x3xf32>
    tpu.vector_store %arg5[%c6_14, %c509], %12 {strides = array<i32>} : memref<8x512xf32, #tpu.memory_space<vmem>>, vector<2x3xf32>,
    %c0_15 = arith.constant 0 : index
    %c0_16 = arith.constant 0 : index
    %14 = vector.load %arg1[%c0_15, %c0_16] : memref<3x8xf32, #tpu.memory_space<vmem>>, vector<3x8xf32>
    %c0_17 = arith.constant 0 : index
    %c0_18 = arith.constant 0 : index
    %15 = vector.load %arg5[%c0_17, %c0_18] : memref<8x512xf32, #tpu.memory_space<vmem>>, vector<8x512xf32>
    %cst = arith.constant dense<0.000000e+00> : vector<3x512xf32>
    %16 = tpu.matmul %14, %15, %cst {dimension_numbers = #tpu.dot_dimension_numbers<[1], [0], [0], [1], [0, 0, 1, 1], [], []>} : vector<3x8xf32>, vector<8x512xf32>, vector<3x512xf32> -> vector<3x512xf32>
    %c0_19 = arith.constant 0 : index
    %c0_20 = arith.constant 0 : index
    %17 = vector.load %arg4[%c0_19, %c0_20] : memref<3x512xf32, #tpu.memory_space<vmem>>, vector<3x512xf32>
    tpu.vector_store %arg4[%c0_19, %c0_20], %16 {strides = array<i32>} : memref<3x512xf32, #tpu.memory_space<vmem>>, vector<3x512xf32>,
    return
  }
  func.func @transform_0(%arg0: i32) -> (i32, i32) {
    %c0_i32 = arith.constant 0 : i32
    %c0_i32_0 = arith.constant 0 : i32
    %c0_i32_1 = arith.constant 0 : i32
    return %c0_i32, %c0_i32_0 : i32, i32
  }
  func.func @transform_1(%arg0: i32) -> (i32, i32) {
    %c0_i32 = arith.constant 0 : i32
    %c0_i32_0 = arith.constant 0 : i32
    return %c0_i32, %arg0 : i32, i32
  }
  func.func @transform_2(%arg0: i32) -> (i32, i32) {
    %c1_i32 = arith.constant 1 : i32
    %0 = arith.addi %arg0, %c1_i32 : i32
    %c4_i32 = arith.constant 4 : i32
    %1 = arith.muli %0, %c4_i32 : i32
    %c0_i32 = arith.constant 0 : i32
    %c0_i32_0 = arith.constant 0 : i32
    return %c0_i32, %1 : i32, i32
  }
  func.func @transform_3(%arg0: i32) -> (i32, i32) {
    %c0_i32 = arith.constant 0 : i32
    %c0_i32_0 = arith.constant 0 : i32
    return %c0_i32, %arg0 : i32, i32
  }
}

</mosaic_0001>

<bundles_post_ra>
// kernel: _resample_poly_jit.1
= control target key start
LH: loop header
LB: loop body
LE: loop exit
PB: predicated region body
PF: predicated region fallthrough
CT: control target
= control target key end

     0   :  { %s617_s12 = smov 0   ;;  %s678_s0 = inlined_call_operand.vmem [shape: f32[3,8], index: 0, kind: input, shape index: {}]   ;;  %s679_s1 = inlined_call_operand.vmem [shape: f32[2,1152], index: 1, kind: input, shape index: {}, may-alias: {1,2}]   ;;  %s680_s2 = inlined_call_operand.vmem [shape: f32[2,1152], index: 2, kind: input, shape index: {}, may-alias: {1,2}]   ;;  %s681_s3 = inlined_call_operand.vmem [shape: f32[3,1024], index: 3, kind: output, shape index: {}]  }
   0x1 LB: > { %s550_s13 = sadd.s32 4294967295, %s592_s12   ;;  %p556_p0 = scmp.ge.s32.totalorder %s592_s12, 1  ;;  %s592_s12 = sphi %s617_s12, %s13_s12  }
   0x2   : > { %p163_p1 = scmp.lt.s32.totalorder %s592_s12, 3 }
   0x4   : > { %p164_p2 = pnand %p556_p0, %p163_p1 }
   0x5   : > { %s625_s14 = sshll.u32 (!%p164_p2), %s550_s13, 2  ;;  %s594_s25 = smov (!%p164_p2), 127  }
   0x6   : > { %167 = sbr.rel (%p164_p2) target bundleno = 325 (0x145), region = 32  ;;  %s574_s15 = sadd.s32 (!%p164_p2), 4, %s625_s14 }
   0x7   : > { %p202_p3 = scmp.lt.s32.totalorder (!%p164_p2), %s625_s14, 8  ;;  %p213_p4 = scmp.lt.s32.totalorder (!%p164_p2), %s574_s15, 8 }
   0x8   : > { %s595_s26 = smov (!%p164_p2), 126   ;;  %s596_s27 = smov (!%p164_p2), 125  }
   0x9   : > { %p220_p5 = scmp.lt.s32.totalorder (!%p164_p2), %s625_s14, 7 }
   0xb   : > { %s203_s16 = scalar_select %p202_p3, %s625_s14, 8  ;;  %v257_v25 = vlaneseq  ;;  %vm378_vm1 = vcmask 1048558   ;;  %vm286_vm3 = vcmask 1044474   ;;  %vm332_vm5 = vcmask 1046516   ;;  %v380_v59 = vld [vmem:[%s678_s0] sm:$0x7] }
   0xc   : > { %s683_s15 = smov (!%p213_p4, %s574_s15), 8  ;;  %vm385_vm6 = vcmask 64512   ;;  %s685_s14 = smov (!%p220_p5, %s625_s14), 7  ;;  %vm475_vm7 = vcmask 1043456  }
   0xd   : > { %s558_s17 = sshll.u32 %s203_s16, 1  ;;  %s560_s18 = sshll.u32 %s683_s15, 1  ;;  %v258_v27 = vand.u32 127, %v257_v25 }
   0xe   : > { %s205_s21 = scalar_lea.vmem %s679_s1, %s558_s17  ;;  %s216_s24 = scalar_lea.vmem %s680_s2, %s560_s18 }
   0xf   : > { %v225_v0 = vld [vmem:[%s205_s21] sm:$0xff]  ;;  %vm351_vm0 = vcmp.lt.s32.totalorder %v258_v27, 125  ;;  %vm259_vm2 = vcmp.lt.s32.totalorder %v258_v27, 127  ;;  %vm305_vm4 = vcmp.lt.s32.totalorder %v258_v27, 126  ;;  %s562_s30 = sshll.u32 %s685_s14, 2 }
  0x10   : > { %v280_v1 = vld [vmem:[%s216_s24] sm:$0x3]  ;;  %227 = vst [vmem:[#allocation1] ss:$4 sm:$0xff] %v225_v0  ;;  %s223_s6 = scalar_lea.vmem %s681_s3, %s562_s30 }
  0x11   : > { %v326_v2 = vld [vmem:[%s216_s24] sm:$0x3]  ;;  %v282_v3 = vrot.slane %v280_v1, 6 }
  0x12   : > { %v328_v4 = vrot.slane %v326_v2, 4  ;;  %v372_v5 = vld [vmem:[%s216_s24] sm:$0x3] }
  0x13   : > { %v374_v6 = vrot.slane %v372_v5, 2  ;;  %283 = vrot.lane.b32.xlu0 %v282_v3, %s594_s25 }
  0x14   : > { %329 = vrot.lane.b32.xlu1 %v328_v4, %s595_s26 }
  0x15   : > { %375 = vrot.lane.b32.xlu2 %v374_v6, %s596_s27 }
  0x17   : > { %v228_v7 = vld.sshfl [vmem:[#allocation1] sm:$0xff pattern:$0x73625140]  ;;  %v229_v8 = vld.sshfl [vmem:[#allocation1 + $0x8] sm:$0xff pattern:$0x73625140] }
  0x18   : > { %v230_v9 = vld.sshfl [vmem:[#allocation1 + $0x10] sm:$0xff pattern:$0x73625140]  ;;  %v231_v10 = vld.sshfl [vmem:[#allocation1 + $0x18] sm:$0xff pattern:$0x73625140] }
  0x19   : > { %240 = vst [vmem:[#allocation1] ss:$4 sm:$0xff] %v225_v0 }
  0x1a   : > { %236 = vst [vmem:[#allocation2] sm:$0x3] %v228_v7 }
  0x1b   : > { %237 = vst [vmem:[#allocation2 + $0x8] sm:$0x3] %v229_v8 }
  0x1c   : > { %238 = vst [vmem:[#allocation2 + $0x10] sm:$0x3] %v230_v9 }
  0x1d   : > { %239 = vst [vmem:[#allocation2 + $0x18] sm:$0x3] %v231_v10 }
  0x20   : > { %v241_v11 = vld.sshfl [vmem:[#allocation1] sm:$0xff pattern:$0x73625140]  ;;  %v242_v12 = vld.sshfl [vmem:[#allocation1 + $0x8] sm:$0xff pattern:$0x73625140] }
  0x21   : > { %249 = vrot.lane.b32.xlu0 %v241_v11, %s594_s25  ;;  %v243_v13 = vld.sshfl [vmem:[#allocation1 + $0x10] sm:$0xff pattern:$0x73625140]  ;;  %v244_v14 = vld.sshfl [vmem:[#allocation1 + $0x18] sm:$0xff pattern:$0x73625140] }
  0x22   : > { %288 = vst [vmem:[#allocation1] ss:$4 sm:$0xff] %v225_v0 }
  0x29   : > { %255 = vrot.lane.b32.xlu0 %v244_v14, %s594_s25  ;;  %v290_v15 = vld.sshfl [vmem:[#allocation1 + $0x8] sm:$0xff pattern:$0x73625140]  ;;  %v291_v16 = vld.sshfl [vmem:[#allocation1 + $0x10] sm:$0xff pattern:$0x73625140] }
  0x2a   : > { %v289_v17 = vld.sshfl [vmem:[#allocation1] sm:$0xff pattern:$0x73625140]  ;;  %v292_v18 = vld.sshfl [vmem:[#allocation1 + $0x18] sm:$0xff pattern:$0x73625140] }
  0x2b   : > { %297 = vrot.lane.b32.xlu1 %v289_v17, %s595_s26  ;;  %334 = vst [vmem:[#allocation1] ss:$4 sm:$0xff] %v225_v0 }
  0x31   : > { %253 = vrot.lane.b32.xlu0 %v243_v13, %s594_s25 }
  0x32   : > { %v335_v19 = vld.sshfl [vmem:[#allocation1] sm:$0xff pattern:$0x73625140]  ;;  %v338_v20 = vld.sshfl [vmem:[#allocation1 + $0x18] sm:$0xff pattern:$0x73625140] }
  0x33   : > { %303 = vrot.lane.b32.xlu1 %v292_v18, %s595_s26  ;;  %343 = vrot.lane.b32.xlu2 %v335_v19, %s596_s27  ;;  %v337_v21 = vld.sshfl [vmem:[#allocation1 + $0x10] sm:$0xff pattern:$0x73625140]  ;;  %v336_v22 = vld.sshfl [vmem:[#allocation1 + $0x8] sm:$0xff pattern:$0x73625140] }
  0x39   : > { %251 = vrot.lane.b32.xlu0 %v242_v12, %s594_s25 }
  0x3b   : > { %301 = vrot.lane.b32.xlu1 %v291_v16, %s595_s26  ;;  %349 = vrot.lane.b32.xlu2 %v338_v20, %s596_s27 }
  0x43   : > { %299 = vrot.lane.b32.xlu1 %v290_v15, %s595_s26  ;;  %347 = vrot.lane.b32.xlu2 %v337_v21, %s596_s27 }
  0x4b   : > { %345 = vrot.lane.b32.xlu2 %v336_v22, %s596_s27 }
  0x6f   : > { %v376_v23 = vpop.permute.xlu2 %375 }
  0x85   : > { %v284_v24 = vpop.permute.xlu0 %283 }
  0x86   : > { %v330_v28 = vpop.permute.xlu1 %329 }
  0x8d   : > { %v344_v26 = vpop.permute.xlu2 %343 }
  0x93   : > { %v250_v29 = vpop.permute.xlu0 %249 }
  0x95   : > { %v350_v30 = vpop.permute.xlu2 %349 }
  0x96   : > { %v355_v31 = vsel %vm351_vm0, %v350_v30, %v344_v26 }
  0x97   : > { %v363_v32 = vrot.slane %v355_v31, 2 }
  0x99   : > { %371 = vst [vmem:[#allocation2 + $0x18] sm:$0xc0] %v363_v32 }
  0x9a   : > { %379 = vst.msk [vmem:[#allocation2 + $0x18] sm:$0xc0] %vm378_vm1, %v376_v23 }
  0x9b   : > { %v256_v33 = vpop.permute.xlu0 %255 }
  0x9c   : > { %v263_v34 = vsel %vm259_vm2, %v256_v33, %v250_v29 }
  0x9d   : > { %v271_v35 = vrot.slane %v263_v34, 6  ;;  %v298_v36 = vpop.permute.xlu1 %297  ;;  %v348_v37 = vpop.permute.xlu2 %347 }
  0x9e   : > { %v352_v38 = vsel %vm351_vm0, %v348_v37, %v350_v30 }
  0x9f   : > { %279 = vst [vmem:[#allocation2 + $0x18] sm:$0xc] %v271_v35  ;;  %v362_v39 = vrot.slane %v352_v38, 2 }
  0xa0   : > { %287 = vst.msk [vmem:[#allocation2 + $0x18] sm:$0xc] %vm286_vm3, %v284_v24 }
  0xa1   : > { %370 = vst [vmem:[#allocation2 + $0x10] sm:$0xc0] %v362_v39 }
  0xa3   : > { %v254_v40 = vpop.permute.xlu0 %253 }
  0xa4   : > { %v260_v41 = vsel %vm259_vm2, %v254_v40, %v256_v33 }
  0xa5   : > { %v270_v42 = vrot.slane %v260_v41, 6  ;;  %v304_v43 = vpop.permute.xlu1 %303  ;;  %v346_v44 = vpop.permute.xlu2 %345 }
  0xa6   : > { %v309_v45 = vsel %vm305_vm4, %v304_v43, %v298_v36  ;;  %v353_v46 = vsel %vm351_vm0, %v346_v44, %v348_v37  ;;  %v354_v47 = vsel %vm351_vm0, %v344_v26, %v346_v44 }
  0xa7   : > { %278 = vst [vmem:[#allocation2 + $0x10] sm:$0xc] %v270_v42  ;;  %v317_v48 = vrot.slane %v309_v45, 4  ;;  %v360_v49 = vrot.slane %v354_v47, 2  ;;  %v361_v50 = vrot.slane %v353_v46, 2 }
  0xa9   : > { %325 = vst [vmem:[#allocation2 + $0x18] sm:$0x30] %v317_v48 }
  0xaa   : > { %333 = vst.msk [vmem:[#allocation2 + $0x18] sm:$0x30] %vm332_vm5, %v330_v28 }
  0xab   : > { %368 = vst [vmem:[#allocation2] sm:$0xc0] %v360_v49  ;;  %v252_v51 = vpop.permute.xlu0 %251 }
  0xac   : > { %369 = vst [vmem:[#allocation2 + $0x8] sm:$0xc0] %v361_v50  ;;  %v261_v52 = vsel %vm259_vm2, %v252_v51, %v254_v40  ;;  %v262_v53 = vsel %vm259_vm2, %v250_v29, %v252_v51 }
  0xad   : > { %v268_v54 = vrot.slane %v262_v53, 6  ;;  %v269_v55 = vrot.slane %v261_v52, 6  ;;  %v302_v56 = vpop.permute.xlu1 %301 }
  0xae   : > { %v306_v57 = vsel %vm305_vm4, %v302_v56, %v304_v43 }
  0xaf   : > { %276 = vst [vmem:[#allocation2] sm:$0xc] %v268_v54  ;;  %v316_v58 = vrot.slane %v306_v57, 4 }
  0xb0   : > { %277 = vst [vmem:[#allocation2 + $0x8] sm:$0xc] %v269_v55 }
  0xb1   : > { %324 = vst [vmem:[#allocation2 + $0x10] sm:$0x30] %v316_v58  ;;  %v384_v60 = vld [vmem:[#allocation2 + $0x18] sm:$0xff] }
  0xb2   : > { %464 = vmatpush.msra.mxu3 %v384_v60 }
  0xb3   : > { %566 = vmatmul.msk.f32.vlgmr.msra.gmra.mxu3 %vm385_vm6, %v380_v59 }
  0xb5   : > { %v300_v61 = vpop.permute.xlu1 %299 }
  0xb6   : > { %v307_v62 = vsel %vm305_vm4, %v300_v61, %v302_v56  ;;  %v308_v63 = vsel %vm305_vm4, %v298_v36, %v300_v61 }
  0xb7   : > { %v314_v0 = vrot.slane %v308_v63, 4  ;;  %v315_v1 = vrot.slane %v307_v62, 4 }
  0xb8   : > { %v383_v2 = vld [vmem:[#allocation2 + $0x10] sm:$0xff] }
  0xb9   : > { %322 = vst [vmem:[#allocation2] sm:$0x30] %v314_v0  ;;  %444 = vmatpush.msra.mxu2 %v383_v2 }
  0xba   : > { %323 = vst [vmem:[#allocation2 + $0x8] sm:$0x30] %v315_v1  ;;  %565 = vmatmul.msk.f32.vlgmr.msra.gmra.mxu2 %vm385_vm6, %v380_v59 }
  0xc0   : > { %v381_v3 = vld [vmem:[#allocation2] sm:$0xff] }
  0xc1   : > { %404 = vmatpush.msra.mxu0 %v381_v3  ;;  %v382_v4 = vld [vmem:[#allocation2 + $0x8] sm:$0xff] }
  0xc2   : > { %424 = vmatpush.msra.mxu1 %v382_v4  ;;  %563 = vmatmul.msk.f32.vlgmr.msra.gmra.mxu0 %vm385_vm6, %v380_v59 }
  0xc3   : > { %564 = vmatmul.msk.f32.vlgmr.msra.gmra.mxu1 %vm385_vm6, %v380_v59 }
 0x136   : > { %v466_v5 = vpop.f32.mrf.mxu3 }
 0x137   : > { %v474_v6 = vrot.slane %v466_v5, 4 }
 0x13d   : > { %v446_v7 = vpop.f32.mrf.mxu2 }
 0x13e   : > { %v477_v11 = vsel %vm475_vm7, %v446_v7, %v474_v6 }
 0x13f   : > { %v406_v9 = vpop.f32.mrf.mxu0  ;;  %481 = vst [vmem:[%s223_s6 + $0x8] sm:$0x77] %v477_v11 }
 0x140   : > { %v426_v8 = vpop.f32.mrf.mxu1 }
 0x141   : > { %v473_v10 = vrot.slane %v426_v8, 4 }
 0x143   : > { %v476_v12 = vsel %vm475_vm7, %v406_v9, %v473_v10 }
 0x144   : > { %480 = vst [vmem:[%s223_s6] sm:$0x77] %v476_v12 }
 0x145 PF: > { %s13_s12 = sadd.s32 1, %s592_s12  }
 0x146   : > { %p10_p6 = scmp.ge.s32.totalorder %s13_s12, 4  }
 0x148   :  { %12 = sbr.rel (!%p10_p6) target bundleno = 1 (0x1), region = 65 }

</bundles_post_ra>
